<compile_context>
chip_gen: v7x
topology: tpu7x:2x2x1
jax: 0.10.0
libtpu: 0.0.40
codegen_flags: <defaults>
</compile_context>

<pallas_src>
import jax
import jax.numpy as jnp
from jax.experimental import pallas as pl
from jax.experimental.pallas import tpu as pltpu


def _round_up(x, m):
    return ((x + m - 1) // m) * m


def _make_rnn_seq_kernel(h_pad, o_real):
    """Kernel over grid=(T,). Refs:
       x_ref    (1, B_pad, I_pad)  bf16  per-step input slice
       h0_ref   (B_pad, H_pad)     f32   initial hidden        (resident)
       wx_ref   (I_pad, N_pad)     bf16  [Wxh | Wxo]           (resident)
       wh_ref   (H_pad, N_pad)     bf16  [Whh | Who]           (resident)
       b_ref    (B_pad, N_pad)     f32   [bh  | bo] broadcast  (resident)
       out_ref  (1, B_pad, O_pad)  f32   per-step log-softmax slice
       h_ref    (B_pad, H_pad)     f32   hidden-state carry (resident output)
    """

    def kernel(x_ref, h0_ref, wx_ref, wh_ref, b_ref, out_ref, h_ref):
        t = pl.program_id(0)

        @pl.when(t == 0)
        def _():
            h_ref[...] = h0_ref[...]

        x = x_ref[0]                       # (B_pad, I_pad) bf16
        h = h_ref[...]                     # (B_pad, H_pad) f32 carry

        # fused [hidden' | logits] = x @ Wx + h @ Wh + b   (f32 accumulate)
        acc = (jnp.dot(x, wx_ref[...], preferred_element_type=jnp.float32)
               + jnp.dot(h.astype(jnp.bfloat16), wh_ref[...],
                         preferred_element_type=jnp.float32)
               + b_ref[...])               # (B_pad, N_pad) f32

        new_h = acc[:, :h_pad]
        logits = acc[:, h_pad:]

        # mask padded class columns so log-softmax only sees real classes
        col = jax.lax.broadcasted_iota(jnp.int32, logits.shape, 1)
        logits = jnp.where(col < o_real, logits, jnp.float32(-1e30))

        # numerically-stable log-softmax over dim=1 (kept in f32 on all gens)
        m = jnp.max(logits, axis=1, keepdims=True)
        shifted = logits - m
        lse = jnp.log(jnp.sum(jnp.exp(shifted), axis=1, keepdims=True))

        out_ref[0] = shifted - lse
        h_ref[...] = new_h

    return kernel


def prepare_params(w_i2h, b_i2h, w_i2o, b_i2o, input_size, batch_pad=8):
    """One-time weight prep (hoisted out of the per-call path): split the
    PyTorch (out, I+H) Linear weights into x / h halves, transpose to
    (in, out), fuse i2h / i2o on the N axis, zero-pad to (8,128) tiles and
    cast the matmul operands to bf16."""
    H = w_i2h.shape[0]
    O = w_i2o.shape[0]
    I = input_size
    assert w_i2h.shape[1] == I + H and w_i2o.shape[1] == I + H

    I_pad = _round_up(I, 128)
    H_pad = _round_up(H, 128)
    O_pad = _round_up(O, 128)
    N_pad = H_pad + O_pad
    B_pad = _round_up(batch_pad, 8)

    wx = jnp.zeros((I_pad, N_pad), jnp.float32)
    wx = wx.at[:I, :H].set(w_i2h[:, :I].T)
    wx = wx.at[:I, H_pad:H_pad + O].set(w_i2o[:, :I].T)

    wh = jnp.zeros((H_pad, N_pad), jnp.float32)
    wh = wh.at[:H, :H].set(w_i2h[:, I:].T)
    wh = wh.at[:H, H_pad:H_pad + O].set(w_i2o[:, I:].T)

    bias = jnp.zeros((B_pad, N_pad), jnp.float32)
    bias = bias.at[:, :H].set(jnp.broadcast_to(b_i2h, (B_pad, H)))
    bias = bias.at[:, H_pad:H_pad + O].set(jnp.broadcast_to(b_i2o, (B_pad, O)))

    return {
        "wx": wx.astype(jnp.bfloat16),
        "wh": wh.astype(jnp.bfloat16),
        "bias": bias,
        "dims": (I, H, O, I_pad, H_pad, O_pad, B_pad),
    }


def rnn_forward_sequence(xs, h0, params):
    """xs: (T, B, I) f32, h0: (B, H) f32 ->
       (log-probs (T, B, O) f32, final hidden (B, H) f32).
       One pallas_call over the whole sequence."""
    I, H, O, I_pad, H_pad, O_pad, B_pad = params["dims"]
    N_pad = H_pad + O_pad
    T, B, _ = xs.shape
    assert B <= B_pad

    # activation padding / bf16 cast (one-time glue, outside the kernel)
    xs_p = jnp.zeros((T, B_pad, I_pad), jnp.bfloat16)
    xs_p = xs_p.at[:, :B, :I].set(xs.astype(jnp.bfloat16))
    h0_p = jnp.zeros((B_pad, H_pad), jnp.float32).at[:B, :H].set(h0)

    # VMEM budget sanity (v7x has 64 MiB / TensorCore): resident weights + bias
    # + hidden carry + double-buffered per-step x / out tiles must fit.
    resident = ((params["wx"].size + params["wh"].size) * 2
                + params["bias"].size * 4
                + 2 * B_pad * H_pad * 4
                + 2 * (B_pad * I_pad * 2 + B_pad * O_pad * 4))
    assert resident < 48 * 1024 * 1024, "resident working set too big for v7x VMEM"

    kernel = _make_rnn_seq_kernel(H_pad, O)

    out_p, h_p = pl.pallas_call(
        kernel,
        grid=(T,),
        in_specs=[
            pl.BlockSpec((1, B_pad, I_pad), lambda t: (t, 0, 0)),   # x_t
            pl.BlockSpec((B_pad, H_pad), lambda t: (0, 0)),          # h0
            pl.BlockSpec((I_pad, N_pad), lambda t: (0, 0)),          # Wx (resident)
            pl.BlockSpec((H_pad, N_pad), lambda t: (0, 0)),          # Wh (resident)
            pl.BlockSpec((B_pad, N_pad), lambda t: (0, 0)),          # bias (resident)
        ],
        out_specs=(
            pl.BlockSpec((1, B_pad, O_pad), lambda t: (t, 0, 0)),    # log-probs slab
            pl.BlockSpec((B_pad, H_pad), lambda t: (0, 0)),          # hidden carry
        ),
        out_shape=(
            jax.ShapeDtypeStruct((T, B_pad, O_pad), jnp.float32),
            jax.ShapeDtypeStruct((B_pad, H_pad), jnp.float32),
        ),
        compiler_params=pltpu.CompilerParams(
            dimension_semantics=("arbitrary",)),   # recurrent (carry) axis
    )(xs_p, h0_p, params["wx"], params["wh"], params["bias"])

    return out_p[:, :B, :O], h_p[:B, :H]


def rnn_forward(x, h, params):
    """Single-step API matching the PyTorch module forward:
    (input (B, I), hidden (B, H)) -> (log_softmax output (B, O), hidden (B, H))."""
    outs, new_h = rnn_forward_sequence(x[None], h, params)
    return outs[0], new_h


# ----------------------------- references ----------------------------------

def _reference_f32(xs, h0, w_i2h, b_i2h, w_i2o, b_i2o):
    # pure f32 PyTorch semantics (exact module math)
    def step(h, x):
        combined = jnp.concatenate([x, h], axis=1)
        new_h = combined @ w_i2h.T + b_i2h
        logits = combined @ w_i2o.T + b_i2o
        return new_h, jax.nn.log_softmax(logits, axis=1)

    h_final, outs = jax.lax.scan(step, h0, xs)
    return outs, h_final


def _reference_bf16(xs, h0, w_i2h, b_i2h, w_i2o, b_i2o):
    # mirrors the kernel numerics: bf16 matmul inputs, f32 accumulate + carry
    I = xs.shape[-1]
    wxh = w_i2h[:, :I].T.astype(jnp.bfloat16)
    whh = w_i2h[:, I:].T.astype(jnp.bfloat16)
    wxo = w_i2o[:, :I].T.astype(jnp.bfloat16)
    who = w_i2o[:, I:].T.astype(jnp.bfloat16)

    def step(h, x):
        xb = x.astype(jnp.bfloat16)
        hb = h.astype(jnp.bfloat16)
        new_h = (jnp.dot(xb, wxh, preferred_element_type=jnp.float32)
                 + jnp.dot(hb, whh, preferred_element_type=jnp.float32) + b_i2h)
        logits = (jnp.dot(xb, wxo, preferred_element_type=jnp.float32)
                  + jnp.dot(hb, who, preferred_element_type=jnp.float32) + b_i2o)
        return new_h, jax.nn.log_softmax(logits, axis=1)

    h_final, outs = jax.lax.scan(step, h0, xs)
    return outs, h_final


if __name__ == "__main__":
    key = jax.random.PRNGKey(0)
    T, B = 8, 2
    input_size, hidden_size, output_size = 16, 32, 8

    k_x, k_w1, k_b1, k_w2, k_b2 = jax.random.split(key, 5)

    # deterministic parameter init (PyTorch nn.Linear-style uniform bounds)
    fan_in = input_size + hidden_size
    bound = 1.0 / jnp.sqrt(jnp.float32(fan_in))
    w_i2h = jax.random.uniform(k_w1, (hidden_size, fan_in), jnp.float32, -bound, bound)
    b_i2h = jax.random.uniform(k_b1, (hidden_size,), jnp.float32, -bound, bound)
    w_i2o = jax.random.uniform(k_w2, (output_size, fan_in), jnp.float32, -bound, bound)
    b_i2o = jax.random.uniform(k_b2, (output_size,), jnp.float32, -bound, bound)

    xs = jax.random.normal(k_x, (T, B, input_size), jnp.float32)   # char sequence
    h0 = jnp.zeros((B, hidden_size), jnp.float32)                  # initHidden(), batched

    params = prepare_params(w_i2h, b_i2h, w_i2o, b_i2o, input_size,
                            batch_pad=_round_up(B, 8))

    outs, h_final = rnn_forward_sequence(xs, h0, params)
    jax.block_until_ready((outs, h_final))

    # check vs. a reference that mirrors the kernel's bf16-matmul/f32-accumulate
    ref_o_bf, ref_h_bf = _reference_bf16(xs, h0, w_i2h, b_i2h, w_i2o, b_i2o)
    assert jnp.allclose(outs, ref_o_bf, atol=1e-2), "log-softmax mismatch (bf16 ref)"
    assert jnp.allclose(h_final, ref_h_bf, atol=1e-2), "hidden mismatch (bf16 ref)"

    # looser check vs. exact f32 PyTorch semantics (bf16 quantisation only)
    ref_o32, ref_h32 = _reference_f32(xs, h0, w_i2h, b_i2h, w_i2o, b_i2o)
    assert jnp.allclose(outs, ref_o32, atol=1e-1), "log-softmax mismatch (f32 ref)"
    assert jnp.allclose(h_final, ref_h32, atol=1e-1), "hidden mismatch (f32 ref)"

    # single-step API (same signature as the PyTorch module forward)
    out1, h1 = rnn_forward(xs[0], h0, params)
    jax.block_until_ready((out1, h1))
    assert jnp.allclose(out1, outs[0], atol=1e-5), "single-step output mismatch"

    print("KERNEL_OK")
</pallas_src>

<mosaic_0001>
module attributes {stable_mosaic.version = 11 : i64} {
  func.func @kernel(%arg0: i32, %arg1: memref<1x8x128xbf16, #tpu.memory_space<vmem>>, %arg2: memref<8x128xf32, #tpu.memory_space<vmem>>, %arg3: memref<128x256xbf16, #tpu.memory_space<vmem>>, %arg4: memref<128x256xbf16, #tpu.memory_space<vmem>>, %arg5: memref<8x256xf32, #tpu.memory_space<vmem>>, %arg6: memref<1x8x128xf32, #tpu.memory_space<vmem>>, %arg7: memref<8x128xf32, #tpu.memory_space<vmem>>) attributes {dimension_semantics = [#tpu.dimension_semantics<arbitrary>], iteration_bounds = array<i64: 8>, scalar_prefetch = 0 : i64, scratch_operands = 0 : i64, tpu.core_type = #tpu.core_type<tc>, window_params = [{transform_indices = @transform_0, window_bounds = array<i64: 1, 8, 128>}, {pipeline_mode = #tpu.pipeline_mode<synchronous>, transform_indices = @transform_1, window_bounds = array<i64: 8, 128>}, {pipeline_mode = #tpu.pipeline_mode<synchronous>, transform_indices = @transform_2, window_bounds = array<i64: 128, 256>}, {pipeline_mode = #tpu.pipeline_mode<synchronous>, transform_indices = @transform_3, window_bounds = array<i64: 128, 256>}, {pipeline_mode = #tpu.pipeline_mode<synchronous>, transform_indices = @transform_4, window_bounds = array<i64: 8, 256>}, {transform_indices = @transform_5, window_bounds = array<i64: 1, 8, 128>}, {pipeline_mode = #tpu.pipeline_mode<synchronous>, transform_indices = @transform_6, window_bounds = array<i64: 8, 128>}]} {
    %c0_i32 = arith.constant 0 : i32
    %0 = arith.cmpi eq, %arg0, %c0_i32 : i32
    %1 = arith.extui %0 : i1 to i32
    %c0_i32_0 = arith.constant 0 : i32
    %2 = arith.cmpi ne, %1, %c0_i32_0 : i32
    scf.if %2 {
      %c0_20 = arith.constant 0 : index
      %c0_21 = arith.constant 0 : index
      %35 = vector.load %arg2[%c0_20, %c0_21] : memref<8x128xf32, #tpu.memory_space<vmem>>, vector<8x128xf32>
      %c0_22 = arith.constant 0 : index
      %c0_23 = arith.constant 0 : index
      %36 = vector.load %arg7[%c0_22, %c0_23] : memref<8x128xf32, #tpu.memory_space<vmem>>, vector<8x128xf32>
      tpu.vector_store %arg7[%c0_22, %c0_23], %35 {strides = array<i32>} : memref<8x128xf32, #tpu.memory_space<vmem>>, vector<8x128xf32>,
    } else {
    }
    %c0 = arith.constant 0 : index
    %c0_1 = arith.constant 0 : index
    %c0_2 = arith.constant 0 : index
    %3 = vector.load %arg1[%c0, %c0_1, %c0_2] : memref<1x8x128xbf16, #tpu.memory_space<vmem>>, vector<1x8x128xbf16>
    %4 = vector.shape_cast %3 : vector<1x8x128xbf16> to vector<8x128xbf16>
    %c0_3 = arith.constant 0 : index
    %c0_4 = arith.constant 0 : index
    %5 = vector.load %arg7[%c0_3, %c0_4] : memref<8x128xf32, #tpu.memory_space<vmem>>, vector<8x128xf32>
    %c0_5 = arith.constant 0 : index
    %c0_6 = arith.constant 0 : index
    %6 = vector.load %arg3[%c0_5, %c0_6] : memref<128x256xbf16, #tpu.memory_space<vmem>>, vector<128x256xbf16>
    %cst = arith.constant dense<0.000000e+00> : vector<8x256xf32>
    %7 = tpu.matmul %4, %6, %cst {dimension_numbers = #tpu.dot_dimension_numbers<[1], [0], [0], [1], [0, 0, 1, 1], [], []>} : vector<8x128xbf16>, vector<128x256xbf16>, vector<8x256xf32> -> vector<8x256xf32>
    %8 = arith.truncf %5 : vector<8x128xf32> to vector<8x128xbf16>
    %c0_7 = arith.constant 0 : index
    %c0_8 = arith.constant 0 : index
    %9 = vector.load %arg4[%c0_7, %c0_8] : memref<128x256xbf16, #tpu.memory_space<vmem>>, vector<128x256xbf16>
    %cst_9 = arith.constant dense<0.000000e+00> : vector<8x256xf32>
    %10 = tpu.matmul %8, %9, %cst_9 {dimension_numbers = #tpu.dot_dimension_numbers<[1], [0], [0], [1], [0, 0, 1, 1], [], []>} : vector<8x128xbf16>, vector<128x256xbf16>, vector<8x256xf32> -> vector<8x256xf32>
    %11 = arith.addf %7, %10 : vector<8x256xf32>
    %c0_10 = arith.constant 0 : index
    %c0_11 = arith.constant 0 : index
    %12 = vector.load %arg5[%c0_10, %c0_11] : memref<8x256xf32, #tpu.memory_space<vmem>>, vector<8x256xf32>
    %13 = arith.addf %11, %12 : vector<8x256xf32>
    %14 = vector.extract_strided_slice %13 {offsets = [0, 0], sizes = [8, 128], strides = [1, 1]} : vector<8x256xf32> to vector<8x128xf32>
    %15 = vector.extract_strided_slice %13 {offsets = [0, 128], sizes = [8, 128], strides = [1, 1]} : vector<8x256xf32> to vector<8x128xf32>
    %16 = tpu.iota {dimensions = array<i32: 1>} : vector<8x128xi32>
    %c8_i32 = arith.constant 8 : i32
    %17 = vector.broadcast %c8_i32 : i32 to vector<8x128xi32>
    %18 = arith.cmpi slt, %16, %17 : vector<8x128xi32>
    %cst_12 = arith.constant -1.000000e+30 : f32
    %19 = vector.broadcast %cst_12 : f32 to vector<8x128xf32>
    %20 = arith.select %18, %15, %19 : vector<8x128xi1>, vector<8x128xf32>
    %cst_13 = arith.constant dense<0xFF800000> : vector<8xf32>
    %21 = vector.multi_reduction <maximumf>, %20, %cst_13 [1] : vector<8x128xf32> to vector<8xf32>
    %22 = vector.shape_cast %21 : vector<8xf32> to vector<8x1xf32>
    %23 = vector.broadcast %22 : vector<8x1xf32> to vector<8x128xf32>
    %24 = arith.subf %20, %23 : vector<8x128xf32>
    %25 = math.exp %24 : vector<8x128xf32>
    %cst_14 = arith.constant dense<0.000000e+00> : vector<8xf32>
    %26 = vector.multi_reduction <add>, %25, %cst_14 [1] : vector<8x128xf32> to vector<8xf32>
    %27 = vector.shape_cast %26 : vector<8xf32> to vector<8x1xf32>
    %28 = math.log %27 : vector<8x1xf32>
    %29 = vector.broadcast %28 : vector<8x1xf32> to vector<8x128xf32>
    %30 = arith.subf %24, %29 : vector<8x128xf32>
    %c0_15 = arith.constant 0 : index
    %c0_16 = arith.constant 0 : index
    %c0_17 = arith.constant 0 : index
    %31 = vector.load %arg6[%c0_15, %c0_16, %c0_17] : memref<1x8x128xf32, #tpu.memory_space<vmem>>, vector<1x8x128xf32>
    %32 = vector.shape_cast %31 : vector<1x8x128xf32> to vector<8x128xf32>
    %33 = vector.shape_cast %30 : vector<8x128xf32> to vector<1x8x128xf32>
    tpu.vector_store %arg6[%c0_15, %c0_16, %c0_17], %33 {strides = array<i32>} : memref<1x8x128xf32, #tpu.memory_space<vmem>>, vector<1x8x128xf32>,
    %c0_18 = arith.constant 0 : index
    %c0_19 = arith.constant 0 : index
    %34 = vector.load %arg7[%c0_18, %c0_19] : memref<8x128xf32, #tpu.memory_space<vmem>>, vector<8x128xf32>
    tpu.vector_store %arg7[%c0_18, %c0_19], %14 {strides = array<i32>} : memref<8x128xf32, #tpu.memory_space<vmem>>, vector<8x128xf32>,
    return
  }
  func.func @transform_0(%arg0: i32) -> (i32, i32, i32) {
    %c0_i32 = arith.constant 0 : i32
    %c0_i32_0 = arith.constant 0 : i32
    %c0_i32_1 = arith.constant 0 : i32
    return %arg0, %c0_i32, %c0_i32_0 : i32, i32, i32
  }
  func.func @transform_1(%arg0: i32) -> (i32, i32) {
    %c0_i32 = arith.constant 0 : i32
    %c0_i32_0 = arith.constant 0 : i32
    %c0_i32_1 = arith.constant 0 : i32
    return %c0_i32, %c0_i32_0 : i32, i32
  }
  func.func @transform_2(%arg0: i32) -> (i32, i32) {
    %c0_i32 = arith.constant 0 : i32
    %c0_i32_0 = arith.constant 0 : i32
    %c0_i32_1 = arith.constant 0 : i32
    return %c0_i32, %c0_i32_0 : i32, i32
  }
  func.func @transform_3(%arg0: i32) -> (i32, i32) {
    %c0_i32 = arith.constant 0 : i32
    %c0_i32_0 = arith.constant 0 : i32
    %c0_i32_1 = arith.constant 0 : i32
    return %c0_i32, %c0_i32_0 : i32, i32
  }
  func.func @transform_4(%arg0: i32) -> (i32, i32) {
    %c0_i32 = arith.constant 0 : i32
    %c0_i32_0 = arith.constant 0 : i32
    %c0_i32_1 = arith.constant 0 : i32
    return %c0_i32, %c0_i32_0 : i32, i32
  }
  func.func @transform_5(%arg0: i32) -> (i32, i32, i32) {
    %c0_i32 = arith.constant 0 : i32
    %c0_i32_0 = arith.constant 0 : i32
    %c0_i32_1 = arith.constant 0 : i32
    return %arg0, %c0_i32, %c0_i32_0 : i32, i32, i32
  }
  func.func @transform_6(%arg0: i32) -> (i32, i32) {
    %c0_i32 = arith.constant 0 : i32
    %c0_i32_0 = arith.constant 0 : i32
    %c0_i32_1 = arith.constant 0 : i32
    return %c0_i32, %c0_i32_0 : i32, i32
  }
}

</mosaic_0001>

<bundles_post_ra>
// kernel: tpu_custom_call.1
= control target key start
LH: loop header
LB: loop body
LE: loop exit
PB: predicated region body
PF: predicated region fallthrough
CT: control target
= control target key end

     0   :  { %12 = vsyncpa [#allocation3], 0  ;;  %s1571_s0 = inlined_call_operand.hbm [shape: bf16[8,8,128], index: 0, kind: input, shape index: {}]   ;;  %s1572_s1 = inlined_call_operand.hbm [shape: f32[8,128], index: 1, kind: input, shape index: {}]   ;;  %s1573_s2 = inlined_call_operand.hbm [shape: bf16[128,256], index: 2, kind: input, shape index: {}]   ;;  %s1574_s3 = inlined_call_operand.hbm [shape: bf16[128,256], index: 3, kind: input, shape index: {}]   ;;  %s1575_s4 = inlined_call_operand.hbm [shape: f32[8,256], index: 4, kind: input, shape index: {}]   ;;  %s1576_s5 = inlined_call_operand.hbm [shape: f32[8,8,128], index: 5, kind: output, shape index: {0}]   ;;  %s1577_s6 = inlined_call_operand.hbm [shape: f32[8,128], index: 6, kind: output, shape index: {1}]  }
   0x1   :  { %14 = vsyncpa [#allocation3 + $0x1], 0 }
   0x2   :  { %15 = vsyncpa [#allocation6], 0 }
   0x3   :  { %16 = vsyncpa [#allocation9], 0 }
   0x4   :  { %17 = vsyncpa [#allocation4], 0 }
   0x5   :  { %19 = vsyncpa [#allocation4 + $0x1], 0 }
   0x6   :  { %20 = vsyncpa [#allocation13], 0  ;;  %s1265_s21 = smov 0   ;;  %s1267_s22 = smov 0  }
   0x7   :  { %s1269_s23 = smov 0   ;;  %s1271_s24 = smov 0  }
   0x8 LB: > { %s1220_s25 = smov [#allocation5]   ;;  %s1286_s27 = sadd.s32 4294967295, %s1218_s24   ;;  %s1218_s24 = sphi %s1271_s24, %s1607_s24   ;;  %s1214_s23 = sphi %s1269_s23, %s1606_s23   ;;  %s1210_s22 = sphi %s1267_s22, %s1605_s22   ;;  %s1206_s21 = sphi %s1265_s21, %s1604_s21  }
   0x9   : > { %s201_s26 = sshll.u32 %s1220_s25, 4  ;;  %p769_p0 = scmp.ge.s32.totalorder %s1218_s24, 1  ;;  %s202_s26 = int_to_ptr.vmem [resolvable:$true] %s201_s26 }
   0xa   : > { %p1578_p1 = scmp.eq.s32.totalorder %s1286_s27, 0  ;;  %p188_p2 = scmp.lt.s32.totalorder %s1218_s24, 9 }
   0xb   : > { %s1221_s29 = smov [#allocation8]   ;;  %s1222_s8 = smov [#allocation7]  }
   0xc   : > { %p1292_p4 = pnand %p769_p0, %p188_p2  ;;  %s224_s30 = sshll.u32 %s1221_s29, 4  ;;  %s1304_s30 = int_to_ptr.vmem [resolvable:$true] %s224_s30 }
   0xd   : > { %s211_s9 = sshll.u32 %s1222_s8, 4  ;;  %s972_s12 = scalar_lea.hbm %s1572_s1, 128  ;;  %s1306_s9 = int_to_ptr.vmem [resolvable:$true] %s211_s9 }
   0xe   : > { %s1582_s28 = scalar_select %p1292_p4, 1, 0 }
   0xf   : > { %p847_p5 = pneg %p1292_p4  ;;  %p973_p7 = scmp.ne.s32.totalorder %s1572_s1, %s972_s12 }
  0x10   : > { %p979_p11 = scmp.lt.u32.totalorder %s972_s12, %s1572_s1 }
  0x11   : > { %p1300_p6 = pnand %p847_p5, %p1578_p1 }
  0x13   : > { %p1316_p8 = pneg %p1300_p6 }
  0x15   : > { %p975_p9 = pnand %p1316_p8, %p973_p7 }
  0x17   : > { %p976_p10 = pneg %p975_p9 }
  0x19   : > { %p981_p12 = pnand %p979_p11, %p976_p10 }
  0x1b   : > { %984 = shalt.err (!%p981_p12)
}
  0x1c   : > { %s985_s18 = scalar_lea.vmem %s202_s26, 128  ;;  %p993_p5 = scmp.lt.s32.totalorder %s202_s26, %s202_s26 }
  0x1d   : > { %p986_p13 = scmp.ne.s32.totalorder %s202_s26, %s985_s18  ;;  %p994_p3 = scmp.lt.s32.totalorder %s985_s18, %s985_s18 }
  0x1f   : > { %p988_p0 = pnand %p986_p13, %p1316_p8  ;;  %p995_p1 = por %p994_p3, %p993_p5 }
  0x21   : > { %p989_p2 = pneg %p988_p0 }
  0x23   : > { %p996_p4 = pnand %p995_p1, %p989_p2 }
  0x25   : > { %999 = shalt.err (!%p996_p4)
}
  0x26   : > { %850 = dma.hbm_to_vmem [thread:$0]  (!%p1300_p6), %s1572_s1, 128, %s202_s26, [#allocation6]  }
  0x27   : > { %s1000_s8 = scalar_lea.hbm %s1574_s3, 2048 }
  0x28   : > { %p1001_p7 = scmp.ne.s32.totalorder %s1574_s3, %s1000_s8  ;;  %p1007_p1 = scmp.lt.u32.totalorder %s1000_s8, %s1574_s3 }
  0x2a   : > { %p1003_p9 = pnand %p1001_p7, %p1316_p8 }
  0x2c   : > { %p1004_p3 = pneg %p1003_p9 }
  0x2e   : > { %p1009_p4 = pnand %p1007_p1, %p1004_p3 }
  0x30   : > { %1012 = shalt.err (!%p1009_p4)
}
  0x31   : > { %s1013_s26 = scalar_lea.vmem %s1304_s30, 2048  ;;  %p1021_p13 = scmp.lt.s32.totalorder %s1304_s30, %s1304_s30 }
  0x32   : > { %p1014_p10 = scmp.ne.s32.totalorder %s1304_s30, %s1013_s26  ;;  %p1022_p0 = scmp.lt.s32.totalorder %s1013_s26, %s1013_s26 }
  0x34   : > { %p1016_p11 = pnand %p1014_p10, %p1316_p8  ;;  %p1023_p2 = por %p1022_p0, %p1021_p13 }
  0x36   : > { %p1017_p12 = pneg %p1016_p11 }
  0x38   : > { %p1024_p5 = pnand %p1023_p2, %p1017_p12 }
  0x3a   : > { %1027 = shalt.err (!%p1024_p5)
}
  0x3b   : > { %s1223_s14 = smov 128   ;;  %s1224_s16 = smov 8  }
  0x3c   : > { %856 = dma.hbm_to_vmem [thread:$0]  (!%p1300_p6), %s1574_s3, 2048, %s1304_s30, [#allocation9], %s1223_s14, %s1223_s14, %s1224_s16  }
  0x3d   : > { %s1028_s25 = scalar_lea.hbm %s1573_s2, 2048 }
  0x3e   : > { %p1029_p7 = scmp.ne.s32.totalorder %s1573_s2, %s1028_s25  ;;  %p1035_p1 = scmp.lt.u32.totalorder %s1028_s25, %s1573_s2 }
  0x40   : > { %p1031_p9 = pnand %p1029_p7, %p1316_p8 }
  0x42   : > { %p1032_p3 = pneg %p1031_p9 }
  0x44   : > { %p1037_p4 = pnand %p1035_p1, %p1032_p3 }
  0x46   : > { %1040 = shalt.err (!%p1037_p4)
}
  0x47   : > { %s1041_s30 = scalar_lea.vmem %s1306_s9, 2048  ;;  %p1049_p13 = scmp.lt.s32.totalorder %s1306_s9, %s1306_s9 }
  0x48   : > { %p1042_p10 = scmp.ne.s32.totalorder %s1306_s9, %s1041_s30  ;;  %p1050_p0 = scmp.lt.s32.totalorder %s1041_s30, %s1041_s30 }
  0x4a   : > { %p1044_p11 = pnand %p1042_p10, %p1316_p8  ;;  %p1051_p2 = por %p1050_p0, %p1049_p13 }
  0x4c   : > { %p1045_p12 = pneg %p1044_p11 }
  0x4e   : > { %p1052_p5 = pnand %p1051_p2, %p1045_p12 }
  0x50   : > { %1055 = shalt.err (!%p1052_p5)
}
  0x51   : > { %853 = dma.hbm_to_vmem [thread:$0]  (!%p1300_p6), %s1573_s2, 2048, %s1306_s9, [#allocation6], %s1223_s14, %s1223_s14, %s1224_s16  }
  0x52   : > { %s1225_s26 = smov [#allocation10]   ;;  %s1056_s20 = scalar_lea.hbm %s1575_s4, 256 }
  0x53   : > { %s238_s17 = sshll.u32 %s1225_s26, 4  ;;  %p1057_p7 = scmp.ne.s32.totalorder %s1575_s4, %s1056_s20  ;;  %s239_s17 = int_to_ptr.vmem [resolvable:$true] %s238_s17 }
  0x54   : > { %p1063_p1 = scmp.lt.u32.totalorder %s1056_s20, %s1575_s4 }
  0x55   : > { %p1059_p9 = pnand %p1057_p7, %p1316_p8 }
  0x57   : > { %p1060_p3 = pneg %p1059_p9 }
  0x59   : > { %p1065_p4 = pnand %p1063_p1, %p1060_p3 }
  0x5b   : > { %1068 = shalt.err (!%p1065_p4)
}
  0x5c   : > { %s1069_s9 = scalar_lea.vmem %s239_s17, 256  ;;  %p1077_p13 = scmp.lt.s32.totalorder %s239_s17, %s239_s17 }
  0x5d   : > { %p1070_p10 = scmp.ne.s32.totalorder %s239_s17, %s1069_s9  ;;  %p1078_p0 = scmp.lt.s32.totalorder %s1069_s9, %s1069_s9 }
  0x5f   : > { %p1072_p11 = pnand %p1070_p10, %p1316_p8  ;;  %p1079_p2 = por %p1078_p0, %p1077_p13 }
  0x61   : > { %p1073_p12 = pneg %p1072_p11 }
  0x63   : > { %p1080_p5 = pnand %p1079_p2, %p1073_p12 }
  0x65   : > { %1083 = shalt.err (!%p1080_p5)
}
  0x66   : > { %859 = dma.hbm_to_vmem [thread:$0]  (!%p1300_p6), %s1575_s4, 256, %s239_s17, [#allocation9]  }
  0x67   : > { %s768_s7 = sadd.s32 4294967294, %s1218_s24   ;;  %s1398_s15 = sadd.s32 1, %s1218_s24  }
  0x68   : > { %s30_s11 = ssub.s32 %s1218_s24, %s1398_s15  ;;  %s33_s30 = sadd.s32 1, %s1214_s23 }
  0x69   : > { %p31_p8 = scmp.eq.s32.totalorder %s30_s11, 0  ;;  %p40_p7 = scmp.ne.s32.totalorder %s1214_s23, %s1210_s22 }
  0x6a   : > { %p41_p9 = scmp.eq.s32.totalorder %s1218_s24, 0  ;;  %p46_p3 = scmp.ne.s32.totalorder %s1210_s22, %s1206_s21 }
  0x6b   : > { %s1409_s12 = scalar_select %p31_p8, %s1214_s23, %s33_s30  }
  0x6c   : > { %p1411_p1 = por %p41_p9, %p40_p7  ;;  %p1586_p4 = scmp.eq.s32.totalorder %s1286_s27, 0 }
  0x6d   : > { %p1580_p10 = scmp.eq.s32.totalorder %s1286_s27, 7  ;;  %p160_p11 = scmp.eq.s32.totalorder %s768_s7, 7 }
  0x6e   : > { %p1417_p6 = por %p1586_p4, %p46_p3  ;;  %p872_p12 = scmp.lt.s32.totalorder %s1218_s24, 8 }
  0x6f   : > { %s249_s17 = sand.u32 1, %s1214_s23   ;;  %p1426_p13 = por %p1580_p10, %p40_p7 }
  0x70   : > { %p1430_p0 = por %p160_p11, %p46_p3  ;;  %s775_s20 = sshll.u32 %s249_s17, 2 }
  0x71   : > { %s1588_s18 = scalar_select %p1426_p13, 1, 0 }
  0x72   : > { %s1589_s19 = scalar_select %p1430_p0, 1, 0 }
  0x73   : > { %s776_s25 = sshll.u32 %s1218_s24, 6  ;;  %s253_s9 = scalar_lea.vmem [#allocation2], %s775_s20 }
  0x74   : > { %s1438_s10 = scalar_lea.hbm %s1571_s0, %s776_s25  ;;  %s260_s14 = sshll.u32 %s253_s9, 4  ;;  %s1440_s14 = int_to_ptr.vmem [resolvable:$true] %s260_s14 }
  0x75   : > { %p1444_p2 = pnand %p872_p12, %p1411_p1  ;;  %s250_s7 = scalar_lea.sflag [#allocation3], %s249_s17 }
  0x76   : > { %s1084_s11 = scalar_lea.hbm %s1438_s10, 64  ;;  %s1089_s25 = scalar_lea.hbm %s1571_s0, 512 }
  0x77   : > { %p1085_p5 = scmp.ne.s32.totalorder %s1438_s10, %s1084_s11  ;;  %p1086_p8 = pneg %p1444_p2 }
  0x78   : > { %p1090_p3 = scmp.lt.u32.totalorder %s1438_s10, %s1571_s0  ;;  %p1091_p1 = scmp.lt.u32.totalorder %s1089_s25, %s1084_s11 }
  0x79   : > { %p1087_p7 = pnand %p1086_p8, %p1085_p5  ;;  %p1093_p11 = scmp.lt.u32.totalorder %s1084_s11, %s1438_s10 }
  0x7a   : > { %p1092_p4 = por %p1091_p1, %p1090_p3 }
  0x7b   : > { %p1088_p9 = pneg %p1087_p7 }
  0x7c   : > { %p1094_p12 = por %p1093_p11, %p1092_p4 }
  0x7e   : > { %p1095_p10 = pnand %p1094_p12, %p1088_p9 }
  0x80   : > { %1098 = shalt.err (!%p1095_p10)
}
  0x81   : > { %s1099_s17 = scalar_lea.vmem %s1440_s14, 64  ;;  %s1226_s8 = smov [#allocation2]  }
  0x82   : > { %p1100_p5 = scmp.ne.s32.totalorder %s1440_s14, %s1099_s17  ;;  %s1104_s9 = sshll.u32 %s1226_s8, 4  ;;  %s1105_s9 = int_to_ptr.vmem [resolvable:$false] %s1104_s9 }
  0x83   : > { %s1106_s30 = scalar_lea.vmem %s1105_s9, 128  ;;  %p1107_p13 = scmp.lt.s32.totalorder %s1440_s14, %s1105_s9 }
  0x84   : > { %p1102_p7 = pnand %p1100_p5, %p1086_p8  ;;  %p1108_p3 = scmp.lt.s32.totalorder %s1106_s30, %s1099_s17 }
  0x86   : > { %p1103_p0 = pneg %p1102_p7  ;;  %p1109_p1 = por %p1108_p3, %p1107_p13 }
  0x88   : > { %p1110_p4 = pnand %p1109_p1, %p1103_p0 }
  0x8a   : > { %1113 = shalt.err (!%p1110_p4)
}
  0x8b   : > { %863 = dma.hbm_to_vmem [thread:$0]  (!%p1444_p2), %s1438_s10, 64, %s1440_s14, %s250_s7  }
  0x8c   : > { %p1591_p10 = scmp.ne.s32.totalorder %s1582_s28, 0 }
  0x8d   : > { %s1476_s11 = sand.u32 (!%p1591_p10), 1, %s1210_s22  }
  0x8e   : > { %269 = sbr.rel (%p1591_p10) target bundleno = 751 (0x2ef), region = 40  ;;  %s778_s20 = sshll.u32 (!%p1591_p10), %s1476_s11, 2 }
  0x8f   : > { %s272_s25 = scalar_lea.sflag (!%p1591_p10), [#allocation3], %s1476_s11  ;;  %s1480_s13 = scalar_lea.vmem (!%p1591_p10), [#allocation2], %s778_s20 }
  0x95   : > { %1185 = dma.done.wait (%p1417_p6), %s272_s25, 64  }
  0x96   : > { %1187 = vsyncadd (%p1417_p6), %s272_s25, 4294967232  ;;  %p1592_p13 = scmp.eq.s32.totalorder %s1286_s27, 0 }
  0x98   : > { %1189 = dma.done.wait (%p1592_p13), [#allocation6], 2176   ;;  %p1593_p0 = pmov %p1592_p13 }
  0x9a   : > { %1191 = vsyncadd (%p1593_p0), [#allocation6], 4294965120  ;;  %p1594_p2 = pmov %p1593_p0 }
  0x9b   : > { %p1595_p8 = pmov %p1593_p0 }
  0x9c   : > { %1193 = dma.done.wait (%p1594_p2), [#allocation9], 2304  }
  0x9d   : > { %1195 = vsyncadd (%p1595_p8), [#allocation9], 4294964992  ;;  %s783_s28 = sshll.u32 %s1476_s11, 3  ;;  %p1596_p9 = scmp.ne.s32.totalorder %s1286_s27, 0 }
  0x9e   : > { %s1495_s10 = scalar_lea.vmem [#allocation11], %s783_s28  ;;  %v325_v0 = vld [vmem:[#allocation5] sm:$0xff] (!%p1596_p9) }
  0x9f   : > { %324 = sbr.rel (%p1596_p9) target bundleno = 166 (0xa6), region = 64  ;;  %326 = vst [vmem:[#allocation12] sm:$0xff] (!%p1596_p9), %v325_v0 }
  0xa6 PF: > { %v920_v1 = vld [vmem:[#allocation8 + $0x4] ss:$8 sps:$4 sm:$0xff]   ;;  %v1227_v3 = vmov 0   ;;  %v924_v4 = vld [vmem:[#allocation8] ss:$8 sps:$4 sm:$0xff]   ;;  %v608_v37 = vlaneseq  ;;  %s1228_s26 = smov [#allocation12]  }
  0xa7   : > { %v922_v2 = vld [vmem:[#allocation7 + $0x4] ss:$8 sps:$4 sm:$0xff]   ;;  %474 = vmatprep.mubr.bf16.mxu0 %v1227_v3  ;;  %595 = vmatprep.mubr.bf16.mxu1 %v1227_v3  ;;  %v925_v5 = vld [vmem:[#allocation7] ss:$8 sps:$4 sm:$0xff]   ;;  %v926_v6 = vld [vmem:[#allocation8 + $0x14] ss:$8 sps:$4 sm:$0xff]  }
  0xa8   : > { %442 = vmatprep.subr.bf16.mxu0 %v920_v1  ;;  %563 = vmatprep.subr.bf16.mxu1 %v922_v2  ;;  %v928_v7 = vld [vmem:[#allocation7 + $0x14] ss:$8 sps:$4 sm:$0xff]   ;;  %v930_v8 = vld [vmem:[#allocation8 + $0x10] ss:$8 sps:$4 sm:$0xff]   ;;  %v932_v10 = vld [vmem:[#allocation8 + $0x24] ss:$8 sps:$4 sm:$0xff]  }
  0xa9   : > { %443 = vmatpush1.bf16.msra.mxu0 %v924_v4  ;;  %564 = vmatpush1.bf16.msra.mxu1 %v925_v5  ;;  %v931_v9 = vld [vmem:[#allocation7 + $0x10] ss:$8 sps:$4 sm:$0xff]   ;;  %v934_v11 = vld [vmem:[#allocation7 + $0x24] ss:$8 sps:$4 sm:$0xff]   ;;  %v936_v12 = vld [vmem:[#allocation8 + $0x20] ss:$8 sps:$4 sm:$0xff]  }
  0xaa   : > { %444 = vmatprep.subr.bf16.mxu0 %v926_v6  ;;  %565 = vmatprep.subr.bf16.mxu1 %v928_v7  ;;  %v937_v13 = vld [vmem:[#allocation7 + $0x20] ss:$8 sps:$4 sm:$0xff]   ;;  %v938_v14 = vld [vmem:[#allocation8 + $0x34] ss:$8 sps:$4 sm:$0xff]   ;;  %v942_v16 = vld [vmem:[#allocation8 + $0x30] ss:$8 sps:$4 sm:$0xff]  }
  0xab   : > { %v940_v15 = vld [vmem:[#allocation7 + $0x34] ss:$8 sps:$4 sm:$0xff]   ;;  %v943_v17 = vld [vmem:[#allocation7 + $0x30] ss:$8 sps:$4 sm:$0xff]   ;;  %v944_v18 = vld [vmem:[#allocation8 + $0x44] ss:$8 sps:$4 sm:$0xff]  }
  0xac   : > { %v946_v19 = vld [vmem:[#allocation7 + $0x44] ss:$8 sps:$4 sm:$0xff]   ;;  %v948_v20 = vld [vmem:[#allocation8 + $0x40] ss:$8 sps:$4 sm:$0xff]   ;;  %v950_v22 = vld [vmem:[#allocation8 + $0x54] ss:$8 sps:$4 sm:$0xff]  }
  0xad   : > { %445 = vmatpush1.bf16.msra.mxu0 %v930_v8  ;;  %566 = vmatpush1.bf16.msra.mxu1 %v931_v9  ;;  %v949_v21 = vld [vmem:[#allocation7 + $0x40] ss:$8 sps:$4 sm:$0xff]   ;;  %v952_v23 = vld [vmem:[#allocation7 + $0x54] ss:$8 sps:$4 sm:$0xff]   ;;  %v954_v24 = vld [vmem:[#allocation8 + $0x50] ss:$8 sps:$4 sm:$0xff]  }
  0xae   : > { %446 = vmatprep.subr.bf16.mxu0 %v932_v10  ;;  %567 = vmatprep.subr.bf16.mxu1 %v934_v11  ;;  %v955_v25 = vld [vmem:[#allocation7 + $0x50] ss:$8 sps:$4 sm:$0xff]   ;;  %v956_v26 = vld [vmem:[#allocation8 + $0x64] ss:$8 sps:$4 sm:$0xff]   ;;  %v960_v28 = vld [vmem:[#allocation8 + $0x60] ss:$8 sps:$4 sm:$0xff]  }
  0xaf   : > { %v958_v27 = vld [vmem:[#allocation7 + $0x64] ss:$8 sps:$4 sm:$0xff]   ;;  %v961_v29 = vld [vmem:[#allocation7 + $0x60] ss:$8 sps:$4 sm:$0xff]   ;;  %v962_v30 = vld [vmem:[#allocation8 + $0x74] ss:$8 sps:$4 sm:$0xff]  }
  0xb0   : > { %v964_v31 = vld [vmem:[#allocation7 + $0x74] ss:$8 sps:$4 sm:$0xff]   ;;  %v966_v32 = vld [vmem:[#allocation8 + $0x70] ss:$8 sps:$4 sm:$0xff]   ;;  %v328_v34 = vld [vmem:[#allocation12] sm:$0xff]  ;;  %v609_v38 = vand.u32 127, %v608_v37 }
  0xb1   : > { %447 = vmatpush1.bf16.msra.mxu0 %v936_v12  ;;  %568 = vmatpush1.bf16.msra.mxu1 %v937_v13  ;;  %v967_v33 = vld [vmem:[#allocation7 + $0x70] ss:$8 sps:$4 sm:$0xff]   ;;  %v345_v35 = vpack.c.bf16 %v328_v34, %v328_v34  ;;  %v604_v41 = vld [vmem:[#allocation10] sm:$0xff]  ;;  %v605_v45 = vld [vmem:[#allocation10 + $0x8] sm:$0xff]  ;;  %s649_s14 = sshll.u32 %s1228_s26, 4  ;;  %p1597_p11 = scmp.eq.s32.totalorder %s1286_s27, 7  ;;  %s650_s14 = int_to_ptr.vmem [resolvable:$true] %s649_s14 }
  0xb2   : > { %448 = vmatprep.subr.bf16.mxu0 %v938_v14  ;;  %569 = vmatprep.subr.bf16.mxu1 %v940_v15  ;;  %v327_v36 = vld [vmem:[%s1480_s13] sm:$0xf]  ;;  %vm610_vm0 = vcmp.lt.s32.totalorder %v609_v38, 8  ;;  %s1114_s16 = scalar_lea.vmem %s650_s14, 128  ;;  %p1121_p7 = scmp.lt.s32.totalorder %s650_s14, %s650_s14 }
  0xb3   : > { %p1115_p6 = scmp.ne.s32.totalorder %s650_s14, %s1114_s16  ;;  %p1122_p3 = scmp.lt.s32.totalorder %s1114_s16, %s1114_s16 }
  0xb5   : > { %449 = vmatpush1.bf16.msra.mxu0 %v942_v16  ;;  %570 = vmatpush1.bf16.msra.mxu1 %v943_v17  ;;  %p1116_p12 = pnand %p1115_p6, %p1597_p11  ;;  %p1123_p1 = por %p1122_p3, %p1121_p7 }
  0xb6   : > { %450 = vmatprep.subr.bf16.mxu0 %v944_v18  ;;  %571 = vmatprep.subr.bf16.mxu1 %v946_v19 }
  0xb7   : > { %p1117_p5 = pneg %p1116_p12 }
  0xb9   : > { %451 = vmatpush1.bf16.msra.mxu0 %v948_v20  ;;  %572 = vmatpush1.bf16.msra.mxu1 %v949_v21  ;;  %p1124_p4 = pnand %p1123_p1, %p1117_p5 }
  0xba   : > { %452 = vmatprep.subr.bf16.mxu0 %v950_v22  ;;  %573 = vmatprep.subr.bf16.mxu1 %v952_v23 }
  0xbd   : > { %453 = vmatpush1.bf16.msra.mxu0 %v954_v24  ;;  %574 = vmatpush1.bf16.msra.mxu1 %v955_v25 }
  0xbe   : > { %454 = vmatprep.subr.bf16.mxu0 %v956_v26  ;;  %575 = vmatprep.subr.bf16.mxu1 %v958_v27 }
  0xc1   : > { %455 = vmatpush1.bf16.msra.mxu0 %v960_v28  ;;  %576 = vmatpush1.bf16.msra.mxu1 %v961_v29 }
  0xc2   : > { %456 = vmatprep.subr.bf16.mxu0 %v962_v30  ;;  %577 = vmatprep.subr.bf16.mxu1 %v964_v31 }
  0xc5   : > { %457 = vmatpush1.bf16.msra.mxu0 %v966_v32  ;;  %578 = vmatpush1.bf16.msra.mxu1 %v967_v33 }
  0xc8   : > { %475 = vmatmul.mubr.bf16.vlgmr.msra.gmra.mrb[0].mxu0 %v345_v35  ;;  %596 = vmatmul.mubr.bf16.vlgmr.msra.gmra.mrb[0].mxu1 %v327_v36 }
 0x19b   : > { %v476_v39 = vpop.f32.mrb[0].mxu0  ;;  %v597_v40 = vpop.f32.mrb[0].mxu1 }
 0x19c   : > { %v598_v42 = vadd.f32 %v597_v40, %v476_v39  ;;  %v478_v43 = vpop.f32.mrb[1].mxu0  ;;  %v599_v44 = vpop.f32.mrb[1].mxu1 }
 0x19d   : > { %v600_v46 = vadd.f32 %v599_v44, %v478_v43  ;;  %v480_v47 = vpop.f32.mrb[2].mxu0  ;;  %v601_v48 = vpop.f32.mrb[2].mxu1 }
 0x19e   : > { %v481_v49 = vpop.f32.mrb[3].mxu0  ;;  %v602_v50 = vpop.f32.mrb[3].mxu1  ;;  %v606_v51 = vadd.f32 %v604_v41, %v598_v42 }
 0x19f   : > { %v607_v52 = vadd.f32 %v605_v45, %v600_v46 }
 0x1a0   : > { %623 = vst [vmem:[#allocation12] sm:$0xff] %v606_v51 }
 0x1a1   : > { %v611_v53 = vsel %vm610_vm0, %v607_v52, -1e+30 }
 0x1a2   : > { %612 = vmax.xlane.f32.xlu0 %v611_v53 }
 0x22f   : > { %v613_v54 = vpop.xlane.xlu0 %612 }
 0x230   : > { %v614_v55 = vsub.f32 %v611_v53, %v613_v54 }
 0x232   : > { %v615_v56 = vmul.f32 1.442695, %v614_v55 }
 0x234   : > { %968 = vpow2.f32 %v615_v56 }
 0x23e   : > { %v969_v57 = vpop.eup %968 }
 0x23f   : > { %617 = vadd.xlane.f32.xlu0 %v969_v57 }
 0x240   : > { %1127 = shalt.err (!%p1124_p4)
}
 0x241   : > { %s1128_s17 = scalar_lea.hbm %s1577_s6, 128  ;;  %p1598_p13 = pmov %p1597_p11 }
 0x242   : > { %p1129_p10 = scmp.ne.s32.totalorder %s1577_s6, %s1128_s17  ;;  %p1134_p8 = scmp.lt.u32.totalorder %s1128_s17, %s1577_s6 }
 0x244   : > { %p1130_p0 = pnand %p1129_p10, %p1598_p13 }
 0x246   : > { %p1131_p2 = pneg %p1130_p0 }
 0x248   : > { %p1136_p9 = pnand %p1134_p8, %p1131_p2 }
 0x24a   : > { %1139 = shalt.err (!%p1136_p9)
}
 0x24b   : > { %p1599_p6 = pmov %p1597_p11  ;;  %s818_s28 = sshll.u32 %s1286_s27, 7 }
 0x24c   : > { %s638_s26 = sshll.u32 %s1495_s10, 4  ;;  %s1523_s29 = scalar_lea.hbm %s1576_s5, %s818_s28  ;;  %s1525_s26 = int_to_ptr.vmem [resolvable:$true] %s638_s26 }
 0x24d   : > { %843 = dma.vmem_to_hbm [thread:$0]  (%p1599_p6), %s650_s14, 128, %s1577_s6, [#allocation13]  }
 0x24e   : > { %s625_s17 = scalar_lea.sflag [#allocation4], %s1476_s11  ;;  %s1140_s14 = scalar_lea.vmem %s1525_s26, 128 }
 0x24f   : > { %p1141_p11 = scmp.ne.s32.totalorder %s1525_s26, %s1140_s14  ;;  %p1600_p12 = scmp.ne.s32.totalorder %s1588_s18, 0 }
 0x250   : > { %s1229_s8 = smov [#allocation11]  }
 0x251   : > { %p1142_p5 = pnand %p1141_p11, %p1600_p12  ;;  %s1144_s9 = sshll.u32 %s1229_s8, 4  ;;  %s1145_s9 = int_to_ptr.vmem [resolvable:$false] %s1144_s9 }
 0x252   : > { %s1146_s30 = scalar_lea.vmem %s1145_s9, 256  ;;  %p1147_p3 = scmp.lt.s32.totalorder %s1525_s26, %s1145_s9 }
 0x253   : > { %p1143_p7 = pneg %p1142_p5  ;;  %p1148_p1 = scmp.lt.s32.totalorder %s1146_s30, %s1140_s14 }
 0x255   : > { %p1149_p4 = por %p1148_p1, %p1147_p3 }
 0x257   : > { %p1150_p10 = pnand %p1149_p4, %p1143_p7 }
 0x2cc   : > { %v618_v58 = vpop.xlane.xlu0 %617 }
 0x2cd   : > { %970 = vlog2.f32 %v618_v58 }
 0x2d7   : > { %v971_v59 = vpop.eup %970 }
 0x2d8   : > { %v620_v60 = vmul.f32 0.6931472, %v971_v59 }
 0x2da   : > { %v621_v61 = vsub.f32 %v614_v55, %v620_v60 }
 0x2dc   : > { %622 = vst [vmem:[%s1495_s10] sm:$0xff] %v621_v61 }
 0x2dd   : > { %1153 = shalt.err (!%p1150_p10)
}
 0x2de   : > { %s1154_s11 = scalar_lea.hbm %s1523_s29, 128  ;;  %s1158_s25 = scalar_lea.hbm %s1576_s5, 1024 }
 0x2df   : > { %p1155_p13 = scmp.ne.s32.totalorder %s1523_s29, %s1154_s11  ;;  %p1159_p8 = scmp.lt.u32.totalorder %s1523_s29, %s1576_s5 }
 0x2e0   : > { %p1160_p9 = scmp.lt.u32.totalorder %s1158_s25, %s1154_s11  ;;  %p1162_p11 = scmp.lt.u32.totalorder %s1154_s11, %s1523_s29 }
 0x2e1   : > { %p1156_p0 = pnand %p1155_p13, %p1600_p12 }
 0x2e2   : > { %p1161_p6 = por %p1160_p9, %p1159_p8 }
 0x2e3   : > { %p1157_p2 = pneg %p1156_p0 }
 0x2e4   : > { %p1163_p5 = por %p1162_p11, %p1161_p6 }
 0x2e6   : > { %p1164_p7 = pnand %p1163_p5, %p1157_p2 }
 0x2e8   : > { %1167 = shalt.err (!%p1164_p7)
}
 0x2e9   : > { %841 = dma.vmem_to_hbm [thread:$0]  (%p1600_p12), %s1525_s26, 128, %s1523_s29, %s625_s17  }
 0x2ea   : > { %p1601_p3 = scmp.eq.s32.totalorder %s1286_s27, 7 }
 0x2ec   : > { %1197 = dma.done.wait (%p1601_p3), [#allocation13], 128   ;;  %p1602_p1 = pmov %p1601_p3 }
 0x2ee   : > { %1199 = vsyncadd (%p1602_p1), [#allocation13], 4294967168 }
 0x2ef PF: > { %p879_p4 = scmp.ge.s32.totalorder %s1218_s24, 2  ;;  %s665_s16 = sand.u32 1, %s1206_s21  }
 0x2f0   : > { %p1603_p10 = scmp.ne.s32.totalorder %s1589_s19, 0  ;;  %s666_s7 = scalar_lea.sflag [#allocation4], %s665_s16 }
 0x2f2   : > { %p865_p13 = pnand %p879_p4, %p1603_p10 }
 0x2f4   : > { %1201 = dma.done.wait (!%p865_p13), %s666_s7, 128  }
 0x2f5   : > { %1203 = vsyncadd (!%p865_p13), %s666_s7, 4294967168  ;;  %p23_p12 = scmp.ge.s32.totalorder %s1398_s15, 10   ;;  %s1604_s21 = smov %s1210_s22 }
 0x2f6   : > { %s1605_s22 = smov %s1214_s23  ;;  %s1606_s23 = smov %s1409_s12 }
 0x2f7   : > { %s1607_s24 = smov %s1398_s15  ;;  %25 = sbr.rel (!%p23_p12) target bundleno = 8 (0x8), region = 113 }
 0x2fe   :  { %671 = vsyncpa [#allocation3], 1 }
 0x2ff   :  { %673 = vsyncpa [#allocation3 + $0x1], 1 }
 0x300   :  { %674 = vsyncpa [#allocation6], 1 }
 0x301   :  { %675 = vsyncpa [#allocation9], 1 }
 0x302   :  { %676 = vsyncpa [#allocation4], 1 }
 0x303   :  { %678 = vsyncpa [#allocation4 + $0x1], 1 }
 0x304   :  { %679 = vsyncpa [#allocation13], 1 }

</bundles_post_ra>
